<compile_context>
chip_gen: v7x
topology: tpu7x:2x2x1
jax: 0.10.0
libtpu: 0.0.40
codegen_flags: <defaults>
</compile_context>

<pallas_src>
import jax
import jax.numpy as jnp
from jax.experimental import pallas as pl
from jax.experimental.pallas import tpu as pltpu


def crf_kernel(feats_ref, w_ref, transb_ref, out_ref):
    """One row-tile of the CRF potential computation.

    feats_ref:  (tm, H)     input features
    w_ref:      (H, T)      hidden2tag weight, pre-transposed
    transb_ref: (1, T*T)    (transitions + bias) flattened row-major (from-major, to-minor)
    out_ref:    (tm, T*T)   flattened crf_scores block (lane-dense store)
    """
    T = w_ref.shape[1]
    # Emission score per to-tag on the MXU, f32 accumulation: (tm, T)
    scores = jnp.dot(feats_ref[...], w_ref[...], preferred_element_type=jnp.float32)
    # Lane-tile the scores T times so flat lane index f*T + t holds scores[:, t].
    # Pure lane concatenation -- no (tm, T, T) temporary or in-kernel reshape.
    tiled = jnp.concatenate([scores] * T, axis=-1)                # (tm, T*T)
    out_ref[...] = tiled + transb_ref[...]


def _round8(n):
    return max(8, ((n + 7) // 8) * 8)


def crf_forward(feats, weight, bias, transitions, *, tm=512):
    """
    feats:       (..., hidden_dim) float32
    weight:      (tagset_size, hidden_dim)  -- PyTorch Linear layout
    bias:        (tagset_size,) or None
    transitions: (tagset_size, tagset_size)
    returns:     (ins_num, tagset_size, tagset_size) float32
    """
    hidden_dim = feats.shape[-1]
    tagset_size = weight.shape[0]
    tt = tagset_size * tagset_size

    feats2d = feats.reshape(-1, hidden_dim).astype(jnp.float32)
    ins_num = feats2d.shape[0]

    # Row tile: multiple of 8, never larger than the (rounded) problem, and split so
    # the grid keeps >= 2 steps when there is enough work (v7x has 2 TensorCores).
    tm = min(_round8(tm), _round8(ins_num))
    if ins_num > 8 and ins_num <= tm:
        tm = _round8((ins_num + 1) // 2)

    grid_m = (ins_num + tm - 1) // tm
    padded = grid_m * tm
    if padded != ins_num:
        feats2d = jnp.pad(feats2d, ((0, padded - ins_num), (0, 0)))

    w_t = weight.T.astype(jnp.float32)                            # (H, T)

    # Fold the Linear bias into the transitions (both broadcast over rows).
    trans_b = transitions.astype(jnp.float32)
    if bias is not None:
        trans_b = trans_b + bias.astype(jnp.float32)[None, :]
    trans_b_flat = trans_b.reshape(1, tt)                         # (1, T*T)

    cost = pl.CostEstimate(
        flops=2 * padded * hidden_dim * tagset_size,
        transcendentals=0,
        bytes_accessed=4 * (padded * tt                           # output (dominant)
                            + padded * hidden_dim                 # feats
                            + hidden_dim * tagset_size + tt),     # weights + transitions
    )

    out_flat = pl.pallas_call(
        crf_kernel,
        out_shape=jax.ShapeDtypeStruct((padded, tt), jnp.float32),
        grid_spec=pltpu.PrefetchScalarGridSpec(
            num_scalar_prefetch=0,
            grid=(grid_m,),
            in_specs=[
                pl.BlockSpec((tm, hidden_dim), lambda i: (i, 0)),
                pl.BlockSpec((hidden_dim, tagset_size), lambda i: (0, 0)),
                pl.BlockSpec((1, tt), lambda i: (0, 0)),
            ],
            out_specs=pl.BlockSpec((tm, tt), lambda i: (i, 0)),
        ),
        compiler_params=pltpu.CompilerParams(
            dimension_semantics=("parallel",),
        ),
        cost_estimate=cost,
    )(feats2d, w_t, trans_b_flat)

    return out_flat[:ins_num].reshape(ins_num, tagset_size, tagset_size)


def crf_reference(feats, weight, bias, transitions):
    hidden_dim = feats.shape[-1]
    feats2d = feats.reshape(-1, hidden_dim)
    scores = feats2d @ weight.T
    if bias is not None:
        scores = scores + bias
    return scores[:, None, :] + transitions[None, :, :]


if __name__ == "__main__":
    # Small, deterministic setup consistent with the module's forward:
    # feats of shape (batch, seq, hidden_dim) -> ins_num = batch*seq.
    batch, seq, hidden_dim, tagset_size = 2, 8, 32, 8

    key = jax.random.PRNGKey(0)
    k_feats, k_w, k_b, k_t = jax.random.split(key, 4)

    feats = jax.random.normal(k_feats, (batch, seq, hidden_dim), dtype=jnp.float32)
    # nn.Linear(hidden_dim, tagset_size): weight (T, H), bias (T,)
    weight = jax.random.normal(k_w, (tagset_size, hidden_dim), dtype=jnp.float32) * 0.1
    bias = jax.random.normal(k_b, (tagset_size,), dtype=jnp.float32) * 0.1
    # nn.Parameter(torch.Tensor(T, T)) -- deterministic synthetic init
    transitions = jax.random.normal(k_t, (tagset_size, tagset_size), dtype=jnp.float32) * 0.1

    out = crf_forward(feats, weight, bias, transitions)
    out = jax.block_until_ready(out)

    ref = crf_reference(feats, weight, bias, transitions)
    assert out.shape == (batch * seq, tagset_size, tagset_size), out.shape
    assert jnp.allclose(out, ref, atol=1e-5, rtol=1e-5), "mismatch vs reference"

    print("KERNEL_OK")
</pallas_src>

<mosaic_0001>
module attributes {stable_mosaic.version = 11 : i64} {
  func.func @crf_kernel(%arg0: i32, %arg1: memref<8x32xf32, #tpu.memory_space<vmem>>, %arg2: memref<32x8xf32, #tpu.memory_space<vmem>>, %arg3: memref<1x64xf32, #tpu.memory_space<vmem>>, %arg4: memref<8x64xf32, #tpu.memory_space<vmem>>) attributes {dimension_semantics = [#tpu.dimension_semantics<parallel>], iteration_bounds = array<i64: 2>, scalar_prefetch = 0 : i64, scratch_operands = 0 : i64, tpu.core_type = #tpu.core_type<tc>, window_params = [{transform_indices = @transform_0, window_bounds = array<i64: 8, 32>}, {pipeline_mode = #tpu.pipeline_mode<synchronous>, transform_indices = @transform_1, window_bounds = array<i64: 32, 8>}, {pipeline_mode = #tpu.pipeline_mode<synchronous>, transform_indices = @transform_2, window_bounds = array<i64: 1, 64>}, {transform_indices = @transform_3, window_bounds = array<i64: 8, 64>}]} {
    %c0 = arith.constant 0 : index
    %c0_0 = arith.constant 0 : index
    %0 = vector.load %arg1[%c0, %c0_0] : memref<8x32xf32, #tpu.memory_space<vmem>>, vector<8x32xf32>
    %c0_1 = arith.constant 0 : index
    %c0_2 = arith.constant 0 : index
    %1 = vector.load %arg2[%c0_1, %c0_2] : memref<32x8xf32, #tpu.memory_space<vmem>>, vector<32x8xf32>
    %cst = arith.constant dense<0.000000e+00> : vector<8x8xf32>
    %2 = tpu.matmul %0, %1, %cst {dimension_numbers = #tpu.dot_dimension_numbers<[1], [0], [0], [1], [0, 0, 1, 1], [], []>} : vector<8x32xf32>, vector<32x8xf32>, vector<8x8xf32> -> vector<8x8xf32>
    %3 = tpu.concatenate %2, %2, %2, %2, %2, %2, %2, %2 in 1 : vector<8x8xf32>, vector<8x8xf32>, vector<8x8xf32>, vector<8x8xf32>, vector<8x8xf32>, vector<8x8xf32>, vector<8x8xf32>, vector<8x8xf32> -> vector<8x64xf32>
    %c0_3 = arith.constant 0 : index
    %c0_4 = arith.constant 0 : index
    %4 = vector.load %arg3[%c0_3, %c0_4] : memref<1x64xf32, #tpu.memory_space<vmem>>, vector<1x64xf32>
    %5 = vector.broadcast %4 : vector<1x64xf32> to vector<8x64xf32>
    %6 = arith.addf %3, %5 : vector<8x64xf32>
    %c0_5 = arith.constant 0 : index
    %c0_6 = arith.constant 0 : index
    %7 = vector.load %arg4[%c0_5, %c0_6] : memref<8x64xf32, #tpu.memory_space<vmem>>, vector<8x64xf32>
    tpu.vector_store %arg4[%c0_5, %c0_6], %6 {strides = array<i32>} : memref<8x64xf32, #tpu.memory_space<vmem>>, vector<8x64xf32>,
    return
  }
  func.func @transform_0(%arg0: i32) -> (i32, i32) {
    %c0_i32 = arith.constant 0 : i32
    %c0_i32_0 = arith.constant 0 : i32
    return %arg0, %c0_i32 : i32, i32
  }
  func.func @transform_1(%arg0: i32) -> (i32, i32) {
    %c0_i32 = arith.constant 0 : i32
    %c0_i32_0 = arith.constant 0 : i32
    %c0_i32_1 = arith.constant 0 : i32
    return %c0_i32, %c0_i32_0 : i32, i32
  }
  func.func @transform_2(%arg0: i32) -> (i32, i32) {
    %c0_i32 = arith.constant 0 : i32
    %c0_i32_0 = arith.constant 0 : i32
    %c0_i32_1 = arith.constant 0 : i32
    return %c0_i32, %c0_i32_0 : i32, i32
  }
  func.func @transform_3(%arg0: i32) -> (i32, i32) {
    %c0_i32 = arith.constant 0 : i32
    %c0_i32_0 = arith.constant 0 : i32
    return %arg0, %c0_i32 : i32, i32
  }
}

</mosaic_0001>

<bundles_post_ra>
// kernel: tpu_custom_call.1
= control target key start
LH: loop header
LB: loop body
LE: loop exit
PB: predicated region body
PF: predicated region fallthrough
CT: control target
= control target key end

     0   :  { %8 = vsyncpa [#allocation3], 0  ;;  %s658_s0 = inlined_call_operand.vmem [shape: f32[16,32], index: 0, kind: input, shape index: {}]   ;;  %s659_s1 = inlined_call_operand.vmem [shape: f32[32,8], index: 1, kind: input, shape index: {}]   ;;  %s660_s2 = inlined_call_operand.vmem [shape: f32[1,64], index: 2, kind: input, shape index: {}]   ;;  %s661_s3 = inlined_call_operand.hbm [shape: f32[16,64], index: 3, kind: output, shape index: {}]  }
   0x1   :  { %10 = vsyncpa [#allocation3 + $0x1], 0  ;;  %s541_s12 = smov 0   ;;  %s543_s13 = smov 0  }
   0x2   :  { %s545_s14 = smov 0   ;;  %s547_s15 = smov 0  }
   0x3 LB: > { %s562_s16 = sadd.s32 4294967295, %s508_s15   ;;  %s363_s17 = sadd.s32 4294967294, %s508_s15   ;;  %s508_s15 = sphi %s547_s15, %s667_s15   ;;  %s504_s14 = sphi %s545_s14, %s666_s14   ;;  %s500_s13 = sphi %s543_s13, %s665_s13   ;;  %s496_s12 = sphi %s541_s12, %s664_s12  }
   0x4   : > { %s566_s18 = sadd.s32 1, %s508_s15   ;;  %s91_s19 = sadd.s32 1, %s504_s14 }
   0x5   : > { %s88_s20 = ssub.s32 %s508_s15, %s566_s18  ;;  %p101_p0 = scmp.ne.s32.totalorder %s504_s14, %s500_s13 }
   0x6   : > { %p89_p1 = scmp.eq.s32.totalorder %s88_s20, 0  ;;  %p102_p2 = scmp.eq.s32.totalorder %s562_s16, 1 }
   0x7   : > { %p107_p3 = scmp.ne.s32.totalorder %s500_s13, %s496_s12  ;;  %p108_p4 = scmp.eq.s32.totalorder %s363_s17, 1 }
   0x8   : > { %s577_s21 = scalar_select %p89_p1, %s504_s14, %s91_s19  }
   0x9   : > { %p579_p5 = por %p102_p2, %p101_p0  ;;  %p583_p6 = por %p108_p4, %p107_p3 }
   0xa   : > { %p366_p7 = scmp.ge.s32.totalorder %s508_s15, 1  ;;  %p139_p8 = scmp.lt.s32.totalorder %s508_s15, 3 }
   0xc   : > { %p140_p9 = pnand %p366_p7, %p139_p8 }
   0xd   : > { %v167_v0 = vld [vmem:[%s659_s1] sm:$0xff] (!%p140_p9)  ;;  %v168_v1 = vld [vmem:[%s659_s1 + $0x8] sm:$0xff] (!%p140_p9)  ;;  %v169_v2 = vld [vmem:[%s659_s1 + $0x10] sm:$0xff] (!%p140_p9)  ;;  %v510_v3 = vmov (!%p140_p9), 0.0|0.0   ;;  %vm511_vm0 = vmmov (!%p140_p9), 0   ;;  %v512_v6 = vmov (!%p140_p9), 0.0  }
   0xe   : > { %143 = sbr.rel (%p140_p9) target bundleno = 382 (0x17e), region = 32  ;;  %391 = vmatprep.subr.bf16.mxu0 (!%p140_p9), %v510_v3  ;;  %v392_v4 = vpack.c.bf16 (!%p140_p9), %v168_v1, %v167_v0  ;;  %v170_v5 = vld [vmem:[%s659_s1 + $0x18] sm:$0xff] (!%p140_p9)  ;;  %388 = vmatprep.mubr.msk.f32.mxu0 (!%p140_p9), %vm511_vm0, %v512_v6  ;;  %p162_p10 = scmp.lt.s32.totalorder (!%p140_p9), %s562_s16, 1  ;;  %vm171_vm1 = vcmask (!%p140_p9), 261120   ;;  %vm267_vm2 = vcmask (!%p140_p9), 64512   ;;  %vm269_vm3 = vcmask (!%p140_p9), 130048  }
   0xf   : > { %v395_v7 = vpack.c.bf16 (!%p140_p9), %v170_v5, %v169_v2  ;;  %s513_s10 = smov (!%p140_p9), 24   ;;  %s514_s11 = smov (!%p140_p9), 8   ;;  %vm271_vm4 = vcmask (!%p140_p9), 195584   ;;  %vm274_vm5 = vcmask (!%p140_p9), 326656   ;;  %vm276_vm6 = vcmask (!%p140_p9), 392192  }
  0x10   : > { %393 = vmatpush3.bf16.msra.mxu0 (!%p140_p9), %v392_v4  ;;  %s515_s17 = smov (!%p140_p9), 32   ;;  %s516_s19 = smov (!%p140_p9), 16   ;;  %vm278_vm7 = vcmask (!%p140_p9), 457728   ;;  %v370_v22 = vld [vmem:[%s660_s2] ss:$0 sm:$0xff] (!%p140_p9)  ;;  %vm288_vm8 = vcmask (!%p140_p9), 523264  }
  0x11   : > { %394 = vmatprep.subr.bf16.mxu0 (!%p140_p9), %v510_v3  ;;  %s517_s20 = smov (!%p140_p9), 48   ;;  %s518_s24 = smov (!%p140_p9), 40  }
  0x12   : > { %s519_s25 = smov (!%p140_p9), 56   ;;  %s159_s26 = sand.u32 (!%p140_p9), 1, %s500_s13  }
  0x13   : > { %s367_s27 = sshll.u32 (!%p140_p9), %s159_s26, 3  ;;  %s372_s30 = sshll.u32 (!%p140_p9), %s562_s16, 7 }
  0x14   : > { %396 = vmatpush3.bf16.msra.mxu0 (!%p140_p9), %v395_v7  ;;  %s161_s4 = scalar_lea.vmem (!%p140_p9), [#allocation2], %s367_s27  ;;  %s616_s8 = scalar_lea.hbm (!%p140_p9), %s661_s3, %s372_s30 }
  0x15   : > { %s163_s5 = scalar_select %p162_p10, %s562_s16, 1 }
  0x17   : > { %s368_s6 = sshll.u32 %s163_s5, 3  ;;  %s304_s5 = sshll.u32 %s161_s4, 4  ;;  %s618_s5 = int_to_ptr.vmem [resolvable:$true] %s304_s5 }
  0x18   : > { %s165_s9 = scalar_lea.vmem %s658_s0, %s368_s6  ;;  %s446_s16 = scalar_lea.vmem %s618_s5, 128 }
  0x19   : > { %v166_v8 = vld [vmem:[%s165_s9] sm:$0xff]  ;;  %s291_s9 = scalar_lea.sflag [#allocation3], %s159_s26  ;;  %p447_p11 = scmp.ne.s32.totalorder %s618_s5, %s446_s16 }
  0x1a   : > { %389 = vmatmul.mubr.msk.f32.vlgmr.msra.gmra.mrb[0].mxu0 %vm171_vm1, %v166_v8 }
  0x1b   : > { %p448_p12 = pnand %p447_p11, %p579_p5 }
  0x1d   : > { %p449_p13 = pneg %p448_p12 }
  0xed   : > { %v241_v9 = vpop.f32.mrb[0].mxu0 }
  0xee   : > { %252 = vrot.lane.b32.xlu1 %v241_v9, %s513_s10  ;;  %246 = vrot.lane.b32.xlu0 %v241_v9, %s514_s11  ;;  %v390_v10 = vpop.f32.mrb[1].mxu0  ;;  %s520_s10 = smov [#allocation2]  }
  0xef   : > { %s450_s11 = sshll.u32 %s520_s10, 4  ;;  %s451_s11 = int_to_ptr.vmem [resolvable:$false] %s450_s11 }
  0xf0   : > { %p453_p0 = scmp.lt.s32.totalorder %s618_s5, %s451_s11 }
  0xf2   : > { %255 = vrot.lane.b32.xlu1 %v241_v9, %s515_s17  ;;  %249 = vrot.lane.b32.xlu0 %v241_v9, %s516_s19  ;;  %s452_s17 = scalar_lea.vmem %s451_s11, 256 }
  0xf3   : > { %p454_p1 = scmp.lt.s32.totalorder %s452_s17, %s446_s16 }
  0xf5   : > { %p455_p2 = por %p454_p1, %p453_p0 }
  0xf6   : > { %261 = vrot.lane.b32.xlu1 %v241_v9, %s517_s20  ;;  %258 = vrot.lane.b32.xlu0 %v241_v9, %s518_s24 }
  0xf7   : > { %p456_p3 = pnand %p455_p2, %p449_p13 }
  0xfa   : > { %264 = vrot.lane.b32.xlu0 %v241_v9, %s519_s25 }
 0x160   : > { %v253_v11 = vpop.permute.xlu1 %252  ;;  %v247_v12 = vpop.permute.xlu0 %246 }
 0x161   : > { %v268_v13 = vsel %vm267_vm2, %v241_v9, %v247_v12 }
 0x164   : > { %v256_v14 = vpop.permute.xlu1 %255  ;;  %v250_v15 = vpop.permute.xlu0 %249 }
 0x165   : > { %v270_v16 = vsel %vm269_vm3, %v268_v13, %v250_v15 }
 0x166   : > { %v272_v17 = vsel %vm271_vm4, %v270_v16, %v253_v11 }
 0x167   : > { %v273_v18 = vsel %vm171_vm1, %v272_v17, %v256_v14 }
 0x168   : > { %v259_v19 = vpop.permute.xlu0 %258  ;;  %v262_v20 = vpop.permute.xlu1 %261 }
 0x169   : > { %v275_v21 = vsel %vm274_vm5, %v273_v18, %v259_v19 }
 0x16a   : > { %v277_v23 = vsel %vm276_vm6, %v275_v21, %v262_v20 }
 0x16c   : > { %v265_v24 = vpop.permute.xlu0 %264 }
 0x16d   : > { %v279_v25 = vsel %vm278_vm7, %v277_v23, %v265_v24 }
 0x16e   : > { %v287_v26 = vadd.f32 %v370_v22, %v279_v25 }
 0x170   : > { %289 = vst.msk [vmem:[%s161_s4] sm:$0xff] %vm288_vm8, %v287_v26 }
 0x171   : > { %459 = shalt.err (!%p456_p3)
}
 0x172   : > { %s460_s19 = scalar_lea.hbm %s616_s8, 128  ;;  %s464_s25 = scalar_lea.hbm %s661_s3, 256 }
 0x173   : > { %p461_p4 = scmp.ne.s32.totalorder %s616_s8, %s460_s19  ;;  %p465_p9 = scmp.lt.u32.totalorder %s616_s8, %s661_s3 }
 0x174   : > { %p466_p10 = scmp.lt.u32.totalorder %s464_s25, %s460_s19  ;;  %p468_p12 = scmp.lt.u32.totalorder %s460_s19, %s616_s8 }
 0x175   : > { %p462_p7 = pnand %p461_p4, %p579_p5 }
 0x176   : > { %p467_p11 = por %p466_p10, %p465_p9 }
 0x177   : > { %p463_p8 = pneg %p462_p7 }
 0x178   : > { %p469_p13 = por %p468_p12, %p467_p11 }
 0x17a   : > { %p470_p0 = pnand %p469_p13, %p463_p8 }
 0x17c   : > { %473 = shalt.err (!%p470_p0)
}
 0x17d   : > { %397 = dma.vmem_to_hbm [thread:$0]  (%p579_p5), %s618_s5, 128, %s616_s8, %s291_s9  }
 0x17e PF: > { %p403_p1 = scmp.ge.s32.totalorder %s508_s15, 2  ;;  %s316_s28 = sand.u32 1, %s496_s12  }
 0x17f   : > { %s317_s29 = scalar_lea.sflag [#allocation3], %s316_s28 }
 0x180   : > { %p400_p2 = pnand %p403_p1, %p583_p6 }
 0x182   : > { %491 = dma.done.wait (!%p400_p2), %s317_s29, 128  }
 0x183   : > { %493 = vsyncadd (!%p400_p2), %s317_s29, 4294967168  ;;  %p13_p3 = scmp.ge.s32.totalorder %s566_s18, 4   ;;  %s664_s12 = smov %s500_s13 }
 0x184   : > { %s665_s13 = smov %s504_s14  ;;  %s666_s14 = smov %s577_s21 }
 0x185   : > { %s667_s15 = smov %s566_s18  ;;  %15 = sbr.rel (!%p13_p3) target bundleno = 3 (0x3), region = 67 }
 0x18c   :  { %322 = vsyncpa [#allocation3], 1 }
 0x18d   :  { %324 = vsyncpa [#allocation3 + $0x1], 1 }

</bundles_post_ra>
